<compile_context>
chip_gen: v6e
topology: v6e:2x2x1
jax: 0.10.0
libtpu: 0.0.40
codegen_flags: <defaults>
</compile_context>

<pallas_src>
import functools
import math

import jax
import jax.numpy as jnp
from jax.experimental import pallas as pl
from jax.experimental.pallas import tpu as pltpu


def _norm_kernel(x_ref, g_ref, b_ref, o_ref, *, eps, inv_d):
    # One (tile_rows, d_model) tile: row-wise LayerNorm entirely in VMEM.
    x = x_ref[...].astype(jnp.float32)                       # (T, D)
    s = jnp.sum(x, axis=-1, keepdims=True)                   # (T, 1)  XLU
    s2 = jnp.sum(x * x, axis=-1, keepdims=True)               # (T, 1)  XLU
    mean = s * inv_d
    var = s2 * inv_d - mean * mean                            # biased variance
    inv = jax.lax.rsqrt(var + eps)                            # EUP
    y = (x - mean) * inv * g_ref[...] + b_ref[...]            # g/b already f32
    o_ref[...] = y.astype(o_ref.dtype)


def _pick_tile_rows(rows, d_model, itemsize):
    """Row-tile size: sublane-pack aligned, ~4 MiB input tile, <= 1024 rows."""
    pack = max(8, 32 // max(1, itemsize))      # 8 for f32, 16 for bf16, 32 for int8
    target_bytes = 4 * 1024 * 1024             # ~4 MiB per tile buffer (safe on v5e too)
    # Size against the f32 working set (kernel upcasts to f32 internally).
    tr = target_bytes // max(1, d_model * max(itemsize, 4))
    tr = max(pack, (tr // pack) * pack)
    tr = min(tr, 1024)
    rows_rounded = -(-rows // pack) * pack
    # Keep at least 2 grid steps when the data allows it (v7x has 2 TensorCores;
    # a 1-step "parallel" grid would leave half the chip idle there).
    if tr >= rows_rounded and rows_rounded >= 2 * pack:
        tr = max(pack, (rows_rounded // 2 // pack) * pack)
    return min(tr, rows_rounded)


def layer_norm(x, gamma, beta, *, eps=1e-6, tile_rows=None):
    """x: (..., d_model); gamma, beta: (d_model,). Returns same shape/dtype as x."""
    orig_shape = x.shape
    d_model = orig_shape[-1]
    rows = int(math.prod(orig_shape[:-1])) if len(orig_shape) > 1 else 1
    x2 = x.reshape(rows, d_model)

    itemsize = jnp.dtype(x.dtype).itemsize
    if tile_rows is None:
        tile_rows = _pick_tile_rows(rows, d_model, itemsize)

    # Pre-cast params to f32 once in the wrapper; constant-index BlockSpec keeps
    # them VMEM-resident across the whole grid.
    gamma2 = gamma.astype(jnp.float32).reshape(1, d_model)
    beta2 = beta.astype(jnp.float32).reshape(1, d_model)

    # VMEM budget: 2x double-buffered in + 2x out + ~2 f32-tile intermediates,
    # with 2x headroom, clamped to [32 MiB, 48 MiB] (legal on v7x's 64 MiB VMEM,
    # unlocks large tiles on v5e/v6e's 128 MiB).
    io_tile = tile_rows * d_model * itemsize
    f32_tile = tile_rows * d_model * 4
    est = 4 * io_tile + 2 * f32_tile + 4 * d_model * 4
    vmem_limit = int(min(max(2 * est, 32 * 1024 * 1024), 48 * 1024 * 1024))

    grid = (pl.cdiv(rows, tile_rows),)   # partial tail block is masked by Pallas

    # TODO(synk): for tiny d_model (< 128, e.g. the demo's 32) the output last
    # dim is not lane-dense (masked stores); folding rows into the lane axis
    # would fix that but complicates the row-wise reduction, so it is skipped.
    out = pl.pallas_call(
        functools.partial(_norm_kernel, eps=float(eps), inv_d=1.0 / float(d_model)),
        out_shape=jax.ShapeDtypeStruct((rows, d_model), x.dtype),
        grid_spec=pltpu.PrefetchScalarGridSpec(
            num_scalar_prefetch=0,
            grid=grid,
            in_specs=[
                pl.BlockSpec((tile_rows, d_model), lambda i: (i, 0)),
                pl.BlockSpec((1, d_model), lambda i: (0, 0)),
                pl.BlockSpec((1, d_model), lambda i: (0, 0)),
            ],
            out_specs=pl.BlockSpec((tile_rows, d_model), lambda i: (i, 0)),
        ),
        compiler_params=pltpu.CompilerParams(
            dimension_semantics=("parallel",),
            vmem_limit_bytes=vmem_limit,
        ),
    )(x2, gamma2, beta2)

    return out.reshape(orig_shape)


if __name__ == "__main__":
    batch, seq, d_model = 2, 8, 32
    key = jax.random.PRNGKey(0)
    x = jax.random.normal(key, (batch, seq, d_model), dtype=jnp.float32)

    # Matches nn.Parameter(torch.ones(d_model)) / nn.Parameter(torch.zeros(d_model)).
    gamma = jnp.ones((d_model,), dtype=jnp.float32)
    beta = jnp.zeros((d_model,), dtype=jnp.float32)

    y = layer_norm(x, gamma, beta, eps=1e-6)   # module default eps=1e-06
    jax.block_until_ready(y)

    # Pure-JAX reference (same semantics as the PyTorch module).
    mean = jnp.mean(x, axis=-1, keepdims=True)
    var = jnp.mean((x - mean) ** 2, axis=-1, keepdims=True)
    ref = gamma * (x - mean) / jnp.sqrt(var + 1e-6) + beta
    assert jnp.allclose(y, ref, atol=1e-5, rtol=1e-5), "mismatch vs reference"

    print("KERNEL_OK")
</pallas_src>

<mosaic_0001>
module attributes {stable_mosaic.version = 11 : i64} {
  func.func @_norm_kernel(%arg0: i32, %arg1: memref<8x32xf32, #tpu.memory_space<vmem>>, %arg2: memref<1x32xf32, #tpu.memory_space<vmem>>, %arg3: memref<1x32xf32, #tpu.memory_space<vmem>>, %arg4: memref<8x32xf32, #tpu.memory_space<vmem>>) attributes {dimension_semantics = [#tpu.dimension_semantics<parallel>], iteration_bounds = array<i64: 2>, scalar_prefetch = 0 : i64, scratch_operands = 0 : i64, tpu.core_type = #tpu.core_type<tc>, window_params = [{transform_indices = @transform_0, window_bounds = array<i64: 8, 32>}, {pipeline_mode = #tpu.pipeline_mode<synchronous>, transform_indices = @transform_1, window_bounds = array<i64: 1, 32>}, {pipeline_mode = #tpu.pipeline_mode<synchronous>, transform_indices = @transform_2, window_bounds = array<i64: 1, 32>}, {transform_indices = @transform_3, window_bounds = array<i64: 8, 32>}]} {
    %c0 = arith.constant 0 : index
    %c0_0 = arith.constant 0 : index
    %0 = vector.load %arg1[%c0, %c0_0] : memref<8x32xf32, #tpu.memory_space<vmem>>, vector<8x32xf32>
    %cst = arith.constant dense<0.000000e+00> : vector<8xf32>
    %1 = vector.multi_reduction <add>, %0, %cst [1] : vector<8x32xf32> to vector<8xf32>
    %2 = vector.shape_cast %1 : vector<8xf32> to vector<8x1xf32>
    %3 = arith.mulf %0, %0 : vector<8x32xf32>
    %cst_1 = arith.constant dense<0.000000e+00> : vector<8xf32>
    %4 = vector.multi_reduction <add>, %3, %cst_1 [1] : vector<8x32xf32> to vector<8xf32>
    %5 = vector.shape_cast %4 : vector<8xf32> to vector<8x1xf32>
    %cst_2 = arith.constant 3.125000e-02 : f32
    %6 = vector.broadcast %cst_2 : f32 to vector<8x1xf32>
    %7 = arith.mulf %2, %6 : vector<8x1xf32>
    %cst_3 = arith.constant 3.125000e-02 : f32
    %8 = vector.broadcast %cst_3 : f32 to vector<8x1xf32>
    %9 = arith.mulf %5, %8 : vector<8x1xf32>
    %10 = arith.mulf %7, %7 : vector<8x1xf32>
    %11 = arith.subf %9, %10 : vector<8x1xf32>
    %cst_4 = arith.constant 9.99999997E-7 : f32
    %12 = vector.broadcast %cst_4 : f32 to vector<8x1xf32>
    %13 = arith.addf %11, %12 : vector<8x1xf32>
    %14 = math.rsqrt %13 : vector<8x1xf32>
    %15 = vector.broadcast %7 : vector<8x1xf32> to vector<8x32xf32>
    %16 = arith.subf %0, %15 : vector<8x32xf32>
    %17 = vector.broadcast %14 : vector<8x1xf32> to vector<8x32xf32>
    %18 = arith.mulf %16, %17 : vector<8x32xf32>
    %c0_5 = arith.constant 0 : index
    %c0_6 = arith.constant 0 : index
    %19 = vector.load %arg2[%c0_5, %c0_6] : memref<1x32xf32, #tpu.memory_space<vmem>>, vector<1x32xf32>
    %20 = vector.broadcast %19 : vector<1x32xf32> to vector<8x32xf32>
    %21 = arith.mulf %18, %20 : vector<8x32xf32>
    %c0_7 = arith.constant 0 : index
    %c0_8 = arith.constant 0 : index
    %22 = vector.load %arg3[%c0_7, %c0_8] : memref<1x32xf32, #tpu.memory_space<vmem>>, vector<1x32xf32>
    %23 = vector.broadcast %22 : vector<1x32xf32> to vector<8x32xf32>
    %24 = arith.addf %21, %23 : vector<8x32xf32>
    %c0_9 = arith.constant 0 : index
    %c0_10 = arith.constant 0 : index
    %25 = vector.load %arg4[%c0_9, %c0_10] : memref<8x32xf32, #tpu.memory_space<vmem>>, vector<8x32xf32>
    tpu.vector_store %arg4[%c0_9, %c0_10], %24 {strides = array<i32>} : memref<8x32xf32, #tpu.memory_space<vmem>>, vector<8x32xf32>,
    return
  }
  func.func @transform_0(%arg0: i32) -> (i32, i32) {
    %c0_i32 = arith.constant 0 : i32
    %c0_i32_0 = arith.constant 0 : i32
    return %arg0, %c0_i32 : i32, i32
  }
  func.func @transform_1(%arg0: i32) -> (i32, i32) {
    %c0_i32 = arith.constant 0 : i32
    %c0_i32_0 = arith.constant 0 : i32
    %c0_i32_1 = arith.constant 0 : i32
    return %c0_i32, %c0_i32_0 : i32, i32
  }
  func.func @transform_2(%arg0: i32) -> (i32, i32) {
    %c0_i32 = arith.constant 0 : i32
    %c0_i32_0 = arith.constant 0 : i32
    %c0_i32_1 = arith.constant 0 : i32
    return %c0_i32, %c0_i32_0 : i32, i32
  }
  func.func @transform_3(%arg0: i32) -> (i32, i32) {
    %c0_i32 = arith.constant 0 : i32
    %c0_i32_0 = arith.constant 0 : i32
    return %arg0, %c0_i32 : i32, i32
  }
}

</mosaic_0001>

<bundles_post_ra>
// kernel: tpu_custom_call.1
= control target key start
LH: loop header
LB: loop body
LE: loop exit
PB: predicated region body
PF: predicated region fallthrough
CT: control target
= control target key end

     0   :  { %8 = vsyncpa [#allocation3], 0  ;;  %s632_s0 = inlined_call_operand.hbm [shape: f32[16,32], index: 0, kind: input, shape index: {}]   ;;  %s633_s1 = inlined_call_operand.vmem [shape: f32[1,32], index: 1, kind: input, shape index: {}]   ;;  %s634_s2 = inlined_call_operand.vmem [shape: f32[1,32], index: 2, kind: input, shape index: {}]   ;;  %s635_s3 = inlined_call_operand.hbm [shape: f32[16,32], index: 3, kind: output, shape index: {}]  }
   0x1   :  { %10 = vsyncpa [#allocation3 + $0x1], 0 }
   0x2   :  { %11 = vsyncpa [#allocation4], 0 }
   0x3   :  { %13 = vsyncpa [#allocation4 + $0x1], 0  ;;  %s482_s12 = smov 0   ;;  %s484_s13 = smov 0  }
   0x4   :  { %s486_s14 = smov 0   ;;  %s488_s15 = smov 0  }
   0x5 LB: > { %s503_s16 = sadd.s32 4294967295, %s458_s15   ;;  %s304_s17 = sadd.s32 4294967294, %s458_s15   ;;  %s458_s15 = sphi %s488_s15, %s652_s15   ;;  %s454_s14 = sphi %s486_s14, %s651_s14   ;;  %s450_s13 = sphi %s484_s13, %s650_s13   ;;  %s446_s12 = sphi %s482_s12, %s649_s12  }
   0x6   : > { %s507_s18 = sadd.s32 1, %s458_s15   ;;  %s26_s19 = sadd.s32 1, %s454_s14 }
   0x7   : > { %s23_s20 = ssub.s32 %s458_s15, %s507_s18  ;;  %p33_p0 = scmp.ne.s32.totalorder %s454_s14, %s450_s13 }
   0x8   : > { %p24_p1 = scmp.eq.s32.totalorder %s23_s20, 0  ;;  %p34_p2 = scmp.eq.s32.totalorder %s458_s15, 0 }
   0x9   : > { %p39_p3 = scmp.ne.s32.totalorder %s450_s13, %s446_s12  ;;  %p40_p4 = scmp.eq.s32.totalorder %s503_s16, 0 }
   0xa   : > { %s519_s21 = scalar_select %p24_p1, %s454_s14, %s26_s19  }
   0xb   : > { %p521_p5 = por %p34_p2, %p33_p0  ;;  %p525_p6 = por %p40_p4, %p39_p3 }
   0xc   : > { %p105_p7 = scmp.eq.s32.totalorder %s503_s16, 1  ;;  %p111_p8 = scmp.eq.s32.totalorder %s304_s17, 1 }
   0xd   : > { %s639_s23 = scalar_select %p525_p6, 1, 0 }
   0xe   : > { %p330_p10 = scmp.lt.s32.totalorder %s458_s15, 2  ;;  %p532_p11 = por %p105_p7, %p33_p0 }
   0xf   : > { %p536_p12 = por %p111_p8, %p39_p3  ;;  %s137_s26 = sand.u32 1, %s454_s14  }
  0x10   : > { %s640_s24 = scalar_select %p532_p11, 1, 0 }
  0x11   : > { %s641_s25 = scalar_select %p536_p12, 1, 0 }
  0x12   : > { %s308_s27 = sshll.u32 %s458_s15, 7  ;;  %s307_s28 = sshll.u32 %s137_s26, 3 }
  0x13   : > { %s545_s4 = scalar_lea.hbm %s632_s0, %s308_s27  ;;  %s141_s5 = scalar_lea.vmem [#allocation2], %s307_s28 }
  0x14   : > { %s148_s6 = sshll.u32 %s141_s5, 4  ;;  %p549_p13 = pnand %p330_p10, %p521_p5  ;;  %s553_s6 = int_to_ptr.vmem [resolvable:$true] %s148_s6 }
  0x15   : > { %s138_s8 = scalar_lea.sflag [#allocation3], %s137_s26  ;;  %s366_s9 = scalar_lea.hbm %s545_s4, 128 }
  0x16   : > { %p367_p2 = scmp.ne.s32.totalorder %s545_s4, %s366_s9  ;;  %p368_p3 = pneg %p549_p13 }
  0x17   : > { %s371_s17 = scalar_lea.hbm %s632_s0, 256  ;;  %p372_p5 = scmp.lt.s32.totalorder %s545_s4, %s632_s0 }
  0x18   : > { %p369_p4 = pnand %p368_p3, %p367_p2  ;;  %p373_p8 = scmp.lt.s32.totalorder %s371_s17, %s366_s9 }
  0x1a   : > { %p370_p7 = pneg %p369_p4  ;;  %p374_p10 = por %p373_p8, %p372_p5 }
  0x1c   : > { %p375_p9 = pnand %p374_p10, %p370_p7 }
  0x1e   : > { %378 = shalt.err (!%p375_p9)
}
  0x1f   : > { %s379_s22 = scalar_lea.vmem %s553_s6, 128  ;;  %s460_s26 = smov [#allocation2]  }
  0x20   : > { %p380_p0 = scmp.ne.s32.totalorder %s553_s6, %s379_s22  ;;  %s384_s27 = sshll.u32 %s460_s26, 4  ;;  %s385_s27 = int_to_ptr.vmem [resolvable:$false] %s384_s27 }
  0x21   : > { %s386_s28 = scalar_lea.vmem %s385_s27, 256  ;;  %p387_p4 = scmp.lt.s32.totalorder %s553_s6, %s385_s27 }
  0x22   : > { %p382_p1 = pnand %p380_p0, %p368_p3  ;;  %p388_p12 = scmp.lt.s32.totalorder %s386_s28, %s379_s22 }
  0x24   : > { %p383_p2 = pneg %p382_p1  ;;  %p389_p11 = por %p388_p12, %p387_p4 }
  0x26   : > { %p390_p6 = pnand %p389_p11, %p383_p2 }
  0x28   : > { %393 = shalt.err (!%p390_p6)
}
  0x29   : > { %325 = dma.hbm_to_vmem [thread:$0]  (!%p549_p13), %s545_s4, 128, %s553_s6, %s138_s8  }
  0x2a   : > { %p643_p9 = scmp.lt.s32.totalorder %s458_s15, 3  ;;  %p644_p7 = scmp.ge.s32.totalorder %s458_s15, 1 }
  0x2c   : > { %p154_p0 = pnand %p644_p7, %p643_p9 }
  0x2d   : > { %s580_s29 = sand.u32 (!%p154_p0), 1, %s450_s13   ;;  %p645_p6 = scmp.ne.s32.totalorder (!%p154_p0), %s639_s23, 0 }
  0x2e   : > { %157 = sbr.rel (%p154_p0) target bundleno = 235 (0xeb), region = 32  ;;  %s310_s30 = sshll.u32 (!%p154_p0), %s580_s29, 3 }
  0x2f   : > { %s160_s5 = scalar_lea.sflag (!%p154_p0), [#allocation3], %s580_s29  ;;  %s163_s9 = scalar_lea.vmem (!%p154_p0), [#allocation2], %s310_s30 }
  0x33   : > { %437 = dma.done.wait (%p645_p6), %s160_s5, 128  }
  0x34   : > { %439 = vsyncadd (%p645_p6), %s160_s5, 4294967168  ;;  %vm187_vm0 = vcmask 261120   ;;  %v186_v0 = vld [vmem:[%s163_s9] sm:$0xff]  ;;  %s315_s8 = sshll.u32 %s503_s16, 7  ;;  %s185_s10 = scalar_lea.vmem [#allocation5], %s310_s30 }
  0x35   : > { %v188_v1 = vsel %vm187_vm0, %v186_v0, 0.0  ;;  %v191_v2 = vmul.f32 %v186_v0, %v186_v0  ;;  %v312_v13 = vld [vmem:[%s633_s1] ss:$0 sm:$0xff]  ;;  %s234_s11 = sshll.u32 %s185_s10, 4  ;;  %s232_s20 = scalar_lea.hbm %s635_s3, %s315_s8  ;;  %s235_s11 = int_to_ptr.vmem [resolvable:$true] %s234_s11 }
  0x36   : > { %189 = vadd.xlane.f32.xlu0 %v188_v1  ;;  %v313_v15 = vld [vmem:[%s634_s2] ss:$0 sm:$0xff]  ;;  %s221_s22 = scalar_lea.sflag [#allocation4], %s580_s29  ;;  %s394_s26 = scalar_lea.vmem %s235_s11, 128 }
  0x37   : > { %v192_v3 = vsel %vm187_vm0, %v191_v2, 0.0  ;;  %p395_p11 = scmp.ne.s32.totalorder %s235_s11, %s394_s26  ;;  %p646_p12 = scmp.ne.s32.totalorder %s640_s24, 0 }
  0x38   : > { %s461_s27 = smov [#allocation5]  }
  0x39   : > { %p396_p13 = pnand %p395_p11, %p646_p12  ;;  %s398_s28 = sshll.u32 %s461_s27, 4  ;;  %s399_s28 = int_to_ptr.vmem [resolvable:$false] %s398_s28 }
  0x3a   : > { %193 = vadd.xlane.f32.xlu0 %v192_v3  ;;  %s400_s16 = scalar_lea.vmem %s399_s28, 256  ;;  %p401_p3 = scmp.lt.s32.totalorder %s235_s11, %s399_s28 }
  0x3b   : > { %p397_p1 = pneg %p396_p13  ;;  %p402_p5 = scmp.lt.s32.totalorder %s400_s16, %s394_s26 }
  0x3d   : > { %p403_p8 = por %p402_p5, %p401_p3 }
  0x3f   : > { %p404_p10 = pnand %p403_p8, %p397_p1 }
  0xbf   : > { %v190_v4 = vpop.xlane.xlu0 %189 }
  0xc0   : > { %v195_v5 = vmul.f32 0.03125, %v190_v4 }
  0xc2   : > { %v197_v7 = vmul.f32 %v195_v5, %v195_v5  ;;  %v201_v11 = vsub.f32 %v186_v0, %v195_v5 }
  0xc3   : > { %v194_v6 = vpop.xlane.xlu0 %193 }
  0xc4   : > { %v196_v8 = vmul.f32 0.03125, %v194_v6 }
  0xc6   : > { %v198_v9 = vsub.f32 %v196_v8, %v197_v7 }
  0xc8   : > { %v199_v10 = vadd.f32 1e-06, %v198_v9 }
  0xca   : > { %364 = vrsqrt.f32 %v199_v10 }
  0xd7   : > { %v365_v12 = vpop.eup %364 }
  0xd8   : > { %v202_v14 = vmul.f32 %v365_v12, %v201_v11 }
  0xda   : > { %v210_v16 = vmul.f32 %v312_v13, %v202_v14 }
  0xdc   : > { %v218_v17 = vadd.f32 %v313_v15, %v210_v16 }
  0xde   : > { %219 = vst.msk [vmem:[%s185_s10] sm:$0xff] %vm187_vm0, %v218_v17 }
  0xdf   : > { %407 = shalt.err (!%p404_p10)
}
  0xe0   : > { %s408_s30 = scalar_lea.hbm %s232_s20, 128  ;;  %s412_s9 = scalar_lea.hbm %s635_s3, 256 }
  0xe1   : > { %p409_p2 = scmp.ne.s32.totalorder %s232_s20, %s408_s30  ;;  %p413_p7 = scmp.lt.s32.totalorder %s232_s20, %s635_s3 }
  0xe2   : > { %p414_p0 = scmp.lt.s32.totalorder %s412_s9, %s408_s30 }
  0xe3   : > { %p410_p4 = pnand %p409_p2, %p646_p12 }
  0xe4   : > { %p415_p6 = por %p414_p0, %p413_p7 }
  0xe5   : > { %p411_p9 = pneg %p410_p4 }
  0xe7   : > { %p416_p11 = pnand %p415_p6, %p411_p9 }
  0xe9   : > { %419 = shalt.err (!%p416_p11)
}
  0xea   : > { %320 = dma.vmem_to_hbm [thread:$0]  (%p646_p12), %s235_s11, 128, %s232_s20, %s221_s22  }
  0xeb PF: > { %s246_s6 = sand.u32 1, %s446_s12   ;;  %p647_p13 = scmp.ne.s32.totalorder %s641_s25, 0 }
  0xec   : > { %p648_p1 = scmp.ge.s32.totalorder %s458_s15, 2  ;;  %s247_s7 = scalar_lea.sflag [#allocation4], %s246_s6 }
  0xee   : > { %p327_p3 = pnand %p648_p1, %p647_p13 }
  0xf0   : > { %p328_p5 = pneg %p327_p3 }
  0xf2   : > { %441 = dma.done.wait (%p328_p5), %s247_s7, 128  }
  0xf3   : > { %443 = vsyncadd (%p328_p5), %s247_s7, 4294967168  ;;  %p16_p8 = scmp.ge.s32.totalorder %s507_s18, 4   ;;  %s649_s12 = smov %s450_s13 }
  0xf4   : > { %s650_s13 = smov %s454_s14  ;;  %s651_s14 = smov %s519_s21 }
  0xf5   : > { %s652_s15 = smov %s507_s18  ;;  %18 = sbr.rel (!%p16_p8) target bundleno = 5 (0x5), region = 77 }
  0xfa   :  { %252 = vsyncpa [#allocation3], 1 }
  0xfb   :  { %254 = vsyncpa [#allocation3 + $0x1], 1 }
  0xfc   :  { %255 = vsyncpa [#allocation4], 1 }
  0xfd   :  { %257 = vsyncpa [#allocation4 + $0x1], 1 }

</bundles_post_ra>
